<compile_context>
chip_gen: v5e
topology: v5e:2x2
jax: 0.10.0
libtpu: 0.0.40
codegen_flags: <defaults>
</compile_context>

<pallas_src>
import math
from functools import partial

import jax
import jax.numpy as jnp
from jax.experimental import pallas as pl
from jax.experimental.pallas import tpu as pltpu


DEFAULT_BLOCK_K = 512  # KV tile length; bounds VMEM use (fits v7x's 64 MiB)


# -----------------------------------------------------------------------------
# Pallas flash cross-attention kernel
# -----------------------------------------------------------------------------
def _flash_xattn_kernel(kv_len_ref,               # scalar prefetch (SMEM), [B]
                        q_ref, k_ref, v_ref,      # inputs  (VMEM tiles)
                        o_ref,                    # output  (VMEM tile)
                        m_sc, l_sc, acc_sc,       # VMEM scratch (online softmax)
                        *, scale, block_k):
    """One grid step = (batch b, kv tile t): all heads, full Lq, block_k keys."""
    b = pl.program_id(0)
    t = pl.program_id(1)
    kv_len = kv_len_ref[b]
    start = t * block_k

    @pl.when(t == 0)
    def _init():
        m_sc[...] = jnp.full_like(m_sc, -jnp.inf)
        l_sc[...] = jnp.zeros_like(l_sc)
        acc_sc[...] = jnp.zeros_like(acc_sc)

    @pl.when(start < kv_len)                       # skip fully-padded KV tiles
    def _compute():
        # (Lq, H, hd) -> (H, Lq, hd): minor (lane) dim unchanged, heads become
        # the batch dim of the MXU matmuls.  Scale is folded into q; MXU gets
        # bf16 inputs, accumulates f32.
        q = pltpu.einshape("qhd->hqd", q_ref[0])
        q = (q * scale).astype(jnp.bfloat16)                       # (H, Lq, hd)
        k = pltpu.einshape("khd->hkd", k_ref[0]).astype(jnp.bfloat16)
        v = pltpu.einshape("khd->hkd", v_ref[0]).astype(jnp.bfloat16)

        # s[h, q, kk] = sum_d q[h, q, d] * k[h, kk, d]
        s = jax.lax.dot_general(
            q, k, (((2,), (2,)), ((0,), (0,))),
            preferred_element_type=jnp.float32)                    # (H, Lq, Tk)

        # In-kernel padding mask from the scalar kv_len (f32 softmax math).
        kpos = start + jax.lax.broadcasted_iota(jnp.int32, (1, 1, block_k), 2)
        s = jnp.where(kpos < kv_len, s, -1e30)

        m_prev = m_sc[...]                                          # (H, Lq, 1)
        m_new = jnp.maximum(m_prev, jnp.max(s, axis=-1, keepdims=True))
        alpha = jnp.exp(m_prev - m_new)                             # (H, Lq, 1)
        p = jnp.exp(s - m_new)                                      # (H, Lq, Tk)
        l_sc[...] = alpha * l_sc[...] + jnp.sum(p, axis=-1, keepdims=True)

        pv = jax.lax.dot_general(
            p.astype(jnp.bfloat16), v, (((2,), (1,)), ((0,), (0,))),
            preferred_element_type=jnp.float32)                    # (H, Lq, hd)
        acc_sc[...] = alpha * acc_sc[...] + pv
        m_sc[...] = m_new

    @pl.when(t == pl.num_programs(1) - 1)
    def _finalize():
        l = l_sc[...]
        any_valid = l > 0.0                       # guard kv_len == 0 batches
        l_safe = jnp.where(any_valid, l, jnp.float32(1.0))
        out = acc_sc[...] * pl.reciprocal(l_safe, approx=True)     # (H, Lq, hd)
        out = jnp.where(any_valid, out, jnp.float32(0.0))
        o_ref[0] = pltpu.einshape("hqd->qhd", out).astype(o_ref.dtype)


def flash_cross_attention_pallas(kv_len, q_h, k_h, v_h, scale, *, block_k):
    """kv_len: [B] int32; q_h: [B, Lq, H, hd]; k_h/v_h: [B, Lkv_pad, H, hd]."""
    B, Lq, H, hd = q_h.shape
    _, lkv_pad, _, _ = k_h.shape
    assert lkv_pad % block_k == 0
    num_kv_tiles = lkv_pad // block_k

    kernel = partial(_flash_xattn_kernel, scale=scale, block_k=block_k)
    grid_spec = pltpu.PrefetchScalarGridSpec(
        num_scalar_prefetch=1,
        grid=(B, num_kv_tiles),                    # KV reduction axis last
        in_specs=[
            pl.BlockSpec((1, Lq, H, hd), lambda b, t, lens: (b, 0, 0, 0)),
            pl.BlockSpec((1, block_k, H, hd), lambda b, t, lens: (b, t, 0, 0)),
            pl.BlockSpec((1, block_k, H, hd), lambda b, t, lens: (b, t, 0, 0)),
        ],
        out_specs=pl.BlockSpec((1, Lq, H, hd), lambda b, t, lens: (b, 0, 0, 0)),
        scratch_shapes=[
            pltpu.VMEM((H, Lq, 1), jnp.float32),   # running row max m
            pltpu.VMEM((H, Lq, 1), jnp.float32),   # running denominator l
            pltpu.VMEM((H, Lq, hd), jnp.float32),  # f32 output accumulator
        ],
    )
    return pl.pallas_call(
        kernel,
        out_shape=jax.ShapeDtypeStruct((B, Lq, H, hd), jnp.float32),
        grid_spec=grid_spec,
        compiler_params=pltpu.CompilerParams(
            dimension_semantics=("parallel", "arbitrary"),
            vmem_limit_bytes=48 * 1024 * 1024,     # fits v5e/v6e (128 MiB) & v7x (64 MiB)
        ),
    )(kv_len, q_h, k_h, v_h)


# -----------------------------------------------------------------------------
# Plain-JAX glue (LayerNorm, projections, residual)
# -----------------------------------------------------------------------------
def layer_norm(x, gamma, beta, eps=1e-5):
    mu = jnp.mean(x, axis=-1, keepdims=True)
    var = jnp.mean(jnp.square(x - mu), axis=-1, keepdims=True)
    return (x - mu) * jax.lax.rsqrt(var + eps) * gamma + beta


def init_params(key, d_model):
    ks = jax.random.split(key, 6)
    lim = 1.0 / math.sqrt(d_model)
    u = lambda k, shape: jax.random.uniform(k, shape, jnp.float32, -lim, lim)
    return {
        "gamma_q": jnp.ones((d_model,), jnp.float32),
        "beta_q": jnp.zeros((d_model,), jnp.float32),
        "gamma_kv": jnp.ones((d_model,), jnp.float32),
        "beta_kv": jnp.zeros((d_model,), jnp.float32),
        "Wq": u(ks[0], (d_model, d_model)),        # PyTorch Linear weight [out, in]
        "bq": u(ks[1], (d_model,)),
        "Wkv": u(ks[2], (2 * d_model, d_model)),
        "bkv": u(ks[3], (2 * d_model,)),
        "Wo": u(ks[4], (d_model, d_model)),
        "bo": u(ks[5], (d_model,)),
    }


def flash_cross_attention_layer(params, q, kv, mask=None, *, num_heads,
                                block_k=DEFAULT_BLOCK_K):
    """q: [B, Lq, D], kv: [B, Lkv, D], mask: [B, Lkv] bool (True = padding)."""
    B, Lq, D = q.shape
    _, Lkv, _ = kv.shape
    hd = D // num_heads

    q_res = q
    qn = layer_norm(q, params["gamma_q"], params["beta_q"])
    kvn = layer_norm(kv, params["gamma_kv"], params["beta_kv"])

    # Projections (y = x @ W.T + b, matching nn.Linear).  The packed kv weight
    # is split so K and V come straight out of their own GEMMs -- no strided
    # slice/copy of a [B, Lkv, 2D] activation.
    q_p = qn @ params["Wq"].T + params["bq"]                     # [B, Lq, D]
    Wk, Wv = params["Wkv"][:D], params["Wkv"][D:]
    bk, bv = params["bkv"][:D], params["bkv"][D:]
    k_p = kvn @ Wk.T + bk                                        # [B, Lkv, D]
    v_p = kvn @ Wv.T + bv                                        # [B, Lkv, D]

    # Head split: free reshapes only (no wrapper transposes).
    q_h = q_p.reshape(B, Lq, num_heads, hd)
    k_h = k_p.reshape(B, Lkv, num_heads, hd)
    v_h = v_p.reshape(B, Lkv, num_heads, hd)

    # Per-batch valid KV length (scalar prefetch) instead of a mask tensor.
    if mask is None:
        kv_len = jnp.full((B,), Lkv, jnp.int32)
    else:
        kv_len = jnp.sum(jnp.logical_not(mask), axis=-1).astype(jnp.int32)

    # Tile the KV axis; pad to a multiple of block_k (padded keys are inert
    # because kv_len masks them out inside the kernel).
    bk_eff = min(block_k, Lkv)
    lkv_pad = ((Lkv + bk_eff - 1) // bk_eff) * bk_eff
    if lkv_pad != Lkv:
        pad = ((0, 0), (0, lkv_pad - Lkv), (0, 0), (0, 0))
        k_h = jnp.pad(k_h, pad)
        v_h = jnp.pad(v_h, pad)

    scale = 1.0 / math.sqrt(hd)
    o = flash_cross_attention_pallas(kv_len, q_h, k_h, v_h, scale,
                                     block_k=bk_eff)             # [B, Lq, H, hd]

    # Head merge is a free reshape; then out_proj + residual.
    out = o.reshape(B, Lq, D) @ params["Wo"].T + params["bo"]
    # dropout == identity in eval mode
    return q_res + out


# -----------------------------------------------------------------------------
# Pure-JAX reference (dense softmax attention) for correctness check
# -----------------------------------------------------------------------------
def reference_layer(params, q, kv, mask, num_heads):
    B, Lq, D = q.shape
    _, Lkv, _ = kv.shape
    hd = D // num_heads
    qn = layer_norm(q, params["gamma_q"], params["beta_q"])
    kvn = layer_norm(kv, params["gamma_kv"], params["beta_kv"])
    q_p = qn @ params["Wq"].T + params["bq"]
    kv_p = kvn @ params["Wkv"].T + params["bkv"]
    q_h = q_p.reshape(B, Lq, num_heads, hd)
    kv_h = kv_p.reshape(B, Lkv, 2, num_heads, hd)
    k_h, v_h = kv_h[:, :, 0], kv_h[:, :, 1]
    s = jnp.einsum("bqhd,bkhd->bhqk", q_h, k_h,
                   preferred_element_type=jnp.float32) / math.sqrt(hd)
    if mask is not None:
        s = jnp.where(mask[:, None, None, :], -jnp.inf, s)
    p = jnp.nan_to_num(jax.nn.softmax(s, axis=-1))   # fully-padded rows -> 0
    o = jnp.einsum("bhqk,bkhd->bqhd", p, v_h).reshape(B, Lq, D)
    return q + o @ params["Wo"].T + params["bo"]


# -----------------------------------------------------------------------------
# Demo
# -----------------------------------------------------------------------------
if __name__ == "__main__":
    B, Lq, Lkv, D, H = 2, 8, 16, 32, 4

    key = jax.random.PRNGKey(0)
    k_param, k_q, k_kv = jax.random.split(key, 3)

    params = init_params(k_param, D)
    q = jax.random.normal(k_q, (B, Lq, D), jnp.float32)
    kv = jax.random.normal(k_kv, (B, Lkv, D), jnp.float32)

    # Padding mask (True = padding): batch 0 fully valid, batch 1 pads last 4.
    kv_pos = jnp.arange(Lkv)[None, :]
    kv_valid = jnp.array([Lkv, Lkv - 4])[:, None]
    mask = kv_pos >= kv_valid                                    # [B, Lkv] bool

    out = flash_cross_attention_layer(params, q, kv, mask, num_heads=H)
    out = jax.block_until_ready(out)
    assert out.shape == (B, Lq, D)
    ref = reference_layer(params, q, kv, mask, H)
    assert jnp.allclose(out, ref, atol=5e-2, rtol=5e-2), float(
        jnp.max(jnp.abs(out - ref)))

    # mask=None path.
    out_nm = flash_cross_attention_layer(params, q, kv, None, num_heads=H)
    ref_nm = reference_layer(params, q, kv, None, H)
    assert jnp.allclose(out_nm, ref_nm, atol=5e-2, rtol=5e-2)

    # Fully-padded batch: attention output must be zeros (finite), not mean(V).
    mask_fp = jnp.stack([jnp.zeros((Lkv,), bool), jnp.ones((Lkv,), bool)])
    out_fp = flash_cross_attention_layer(params, q, kv, mask_fp, num_heads=H)
    out_fp = jax.block_until_ready(out_fp)
    assert bool(jnp.all(jnp.isfinite(out_fp)))

    print("KERNEL_OK")
</pallas_src>

<mosaic_0001>
module attributes {stable_mosaic.version = 11 : i64} {
  func.func @_flash_xattn_kernel(%arg0: i32, %arg1: i32, %arg2: memref<2xi32, #tpu.memory_space<smem>>, %arg3: memref<1x8x4x8xf32, #tpu.memory_space<vmem>>, %arg4: memref<1x16x4x8xf32, #tpu.memory_space<vmem>>, %arg5: memref<1x16x4x8xf32, #tpu.memory_space<vmem>>, %arg6: memref<1x8x4x8xf32, #tpu.memory_space<vmem>>, %arg7: memref<4x8x1xf32, #tpu.memory_space<vmem>>, %arg8: memref<4x8x1xf32, #tpu.memory_space<vmem>>, %arg9: memref<4x8x8xf32, #tpu.memory_space<vmem>>) attributes {dimension_semantics = [#tpu.dimension_semantics<parallel>, #tpu.dimension_semantics<arbitrary>], iteration_bounds = array<i64: 2, 1>, scalar_prefetch = 1 : i64, scratch_operands = 3 : i64, tpu.core_type = #tpu.core_type<tc>, window_params = [{transform_indices = @transform_0, window_bounds = array<i64: 1, 8, 4, 8>}, {transform_indices = @transform_1, window_bounds = array<i64: 1, 16, 4, 8>}, {transform_indices = @transform_2, window_bounds = array<i64: 1, 16, 4, 8>}, {transform_indices = @transform_3, window_bounds = array<i64: 1, 8, 4, 8>}]} {
    %0 = arith.index_cast %arg0 : i32 to index
    %1 = memref.load %arg2[%0] : memref<2xi32, #tpu.memory_space<smem>>
    %c16_i32 = arith.constant 16 : i32
    %2 = arith.muli %arg1, %c16_i32 : i32
    %c0_i32 = arith.constant 0 : i32
    %3 = arith.cmpi eq, %arg1, %c0_i32 : i32
    %4 = arith.extui %3 : i1 to i32
    %c0_i32_0 = arith.constant 0 : i32
    %5 = arith.cmpi ne, %4, %c0_i32_0 : i32
    scf.if %5 {
      %cst = arith.constant 0xFF800000 : f32
      %12 = vector.broadcast %cst : f32 to vector<4x8x1xf32>
      %c0 = arith.constant 0 : index
      %c0_4 = arith.constant 0 : index
      %c0_5 = arith.constant 0 : index
      %13 = vector.load %arg7[%c0, %c0_4, %c0_5] : memref<4x8x1xf32, #tpu.memory_space<vmem>>, vector<4x8x1xf32>
      tpu.vector_store %arg7[%c0, %c0_4, %c0_5], %12 {strides = array<i32>} : memref<4x8x1xf32, #tpu.memory_space<vmem>>, vector<4x8x1xf32>,
      %cst_6 = arith.constant 0.000000e+00 : f32
      %14 = vector.broadcast %cst_6 : f32 to vector<4x8x1xf32>
      %c0_7 = arith.constant 0 : index
      %c0_8 = arith.constant 0 : index
      %c0_9 = arith.constant 0 : index
      %15 = vector.load %arg8[%c0_7, %c0_8, %c0_9] : memref<4x8x1xf32, #tpu.memory_space<vmem>>, vector<4x8x1xf32>
      tpu.vector_store %arg8[%c0_7, %c0_8, %c0_9], %14 {strides = array<i32>} : memref<4x8x1xf32, #tpu.memory_space<vmem>>, vector<4x8x1xf32>,
      %cst_10 = arith.constant 0.000000e+00 : f32
      %16 = vector.broadcast %cst_10 : f32 to vector<4x8x8xf32>
      %c0_11 = arith.constant 0 : index
      %c0_12 = arith.constant 0 : index
      %c0_13 = arith.constant 0 : index
      %17 = vector.load %arg9[%c0_11, %c0_12, %c0_13] : memref<4x8x8xf32, #tpu.memory_space<vmem>>, vector<4x8x8xf32>
      tpu.vector_store %arg9[%c0_11, %c0_12, %c0_13], %16 {strides = array<i32>} : memref<4x8x8xf32, #tpu.memory_space<vmem>>, vector<4x8x8xf32>,
    } else {
    }
    %6 = arith.cmpi slt, %2, %1 : i32
    %7 = arith.extui %6 : i1 to i32
    %c0_i32_1 = arith.constant 0 : i32
    %8 = arith.cmpi ne, %7, %c0_i32_1 : i32
    scf.if %8 {
      %c0 = arith.constant 0 : index
      %c0_4 = arith.constant 0 : index
      %c0_5 = arith.constant 0 : index
      %c0_6 = arith.constant 0 : index
      %12 = vector.load %arg3[%c0, %c0_4, %c0_5, %c0_6] : memref<1x8x4x8xf32, #tpu.memory_space<vmem>>, vector<1x8x4x8xf32>
      %13 = vector.shape_cast %12 : vector<1x8x4x8xf32> to vector<8x4x8xf32>
      %14 = tpu.transpose %13, [1, 0, 2] : vector<8x4x8xf32> -> vector<4x8x8xf32>
      %cst = arith.constant 0.353553385 : f32
      %15 = vector.broadcast %cst : f32 to vector<4x8x8xf32>
      %16 = arith.mulf %14, %15 : vector<4x8x8xf32>
      %17 = arith.truncf %16 : vector<4x8x8xf32> to vector<4x8x8xbf16>
      %c0_7 = arith.constant 0 : index
      %c0_8 = arith.constant 0 : index
      %c0_9 = arith.constant 0 : index
      %c0_10 = arith.constant 0 : index
      %18 = vector.load %arg4[%c0_7, %c0_8, %c0_9, %c0_10] : memref<1x16x4x8xf32, #tpu.memory_space<vmem>>, vector<1x16x4x8xf32>
      %19 = vector.shape_cast %18 : vector<1x16x4x8xf32> to vector<16x4x8xf32>
      %20 = tpu.transpose %19, [1, 0, 2] : vector<16x4x8xf32> -> vector<4x16x8xf32>
      %21 = arith.truncf %20 : vector<4x16x8xf32> to vector<4x16x8xbf16>
      %c0_11 = arith.constant 0 : index
      %c0_12 = arith.constant 0 : index
      %c0_13 = arith.constant 0 : index
      %c0_14 = arith.constant 0 : index
      %22 = vector.load %arg5[%c0_11, %c0_12, %c0_13, %c0_14] : memref<1x16x4x8xf32, #tpu.memory_space<vmem>>, vector<1x16x4x8xf32>
      %23 = vector.shape_cast %22 : vector<1x16x4x8xf32> to vector<16x4x8xf32>
      %24 = tpu.transpose %23, [1, 0, 2] : vector<16x4x8xf32> -> vector<4x16x8xf32>
      %25 = arith.truncf %24 : vector<4x16x8xf32> to vector<4x16x8xbf16>
      %cst_15 = arith.constant dense<0.000000e+00> : vector<4x8x16xf32>
      %26 = tpu.matmul %17, %21, %cst_15 {dimension_numbers = #tpu.dot_dimension_numbers<[2], [2], [1], [1], [0, 0, 0, 1, 1, 1], [0], [0]>} : vector<4x8x8xbf16>, vector<4x16x8xbf16>, vector<4x8x16xf32> -> vector<4x8x16xf32>
      %27 = tpu.iota {dimensions = array<i32: 2>} : vector<1x1x16xi32>
      %28 = vector.broadcast %2 : i32 to vector<1x1x16xi32>
      %29 = arith.addi %28, %27 : vector<1x1x16xi32>
      %30 = vector.broadcast %1 : i32 to vector<1x1x16xi32>
      %31 = arith.cmpi slt, %29, %30 : vector<1x1x16xi32>
      %cst_16 = arith.constant -1.000000e+30 : f32
      %32 = vector.shape_cast %31 : vector<1x1x16xi1> to vector<1x1x16xi1>
      %33 = vector.broadcast %32 : vector<1x1x16xi1> to vector<4x8x16xi1>
      %34 = vector.broadcast %cst_16 : f32 to vector<4x8x16xf32>
      %35 = arith.select %33, %26, %34 : vector<4x8x16xi1>, vector<4x8x16xf32>
      %c0_17 = arith.constant 0 : index
      %c0_18 = arith.constant 0 : index
      %c0_19 = arith.constant 0 : index
      %36 = vector.load %arg7[%c0_17, %c0_18, %c0_19] : memref<4x8x1xf32, #tpu.memory_space<vmem>>, vector<4x8x1xf32>
      %cst_20 = arith.constant dense<0xFF800000> : vector<4x8xf32>
      %37 = vector.multi_reduction <maximumf>, %35, %cst_20 [2] : vector<4x8x16xf32> to vector<4x8xf32>
      %38 = vector.shape_cast %37 : vector<4x8xf32> to vector<4x8x1xf32>
      %39 = arith.maximumf %36, %38 : vector<4x8x1xf32>
      %40 = arith.subf %36, %39 : vector<4x8x1xf32>
      %41 = math.exp %40 : vector<4x8x1xf32>
      %42 = vector.broadcast %39 : vector<4x8x1xf32> to vector<4x8x16xf32>
      %43 = arith.subf %35, %42 : vector<4x8x16xf32>
      %44 = math.exp %43 : vector<4x8x16xf32>
      %c0_21 = arith.constant 0 : index
      %c0_22 = arith.constant 0 : index
      %c0_23 = arith.constant 0 : index
      %45 = vector.load %arg8[%c0_21, %c0_22, %c0_23] : memref<4x8x1xf32, #tpu.memory_space<vmem>>, vector<4x8x1xf32>
      %46 = arith.mulf %41, %45 : vector<4x8x1xf32>
      %cst_24 = arith.constant dense<0.000000e+00> : vector<4x8xf32>
      %47 = vector.multi_reduction <add>, %44, %cst_24 [2] : vector<4x8x16xf32> to vector<4x8xf32>
      %48 = vector.shape_cast %47 : vector<4x8xf32> to vector<4x8x1xf32>
      %49 = arith.addf %46, %48 : vector<4x8x1xf32>
      %c0_25 = arith.constant 0 : index
      %c0_26 = arith.constant 0 : index
      %c0_27 = arith.constant 0 : index
      %50 = vector.load %arg8[%c0_25, %c0_26, %c0_27] : memref<4x8x1xf32, #tpu.memory_space<vmem>>, vector<4x8x1xf32>
      tpu.vector_store %arg8[%c0_25, %c0_26, %c0_27], %49 {strides = array<i32>} : memref<4x8x1xf32, #tpu.memory_space<vmem>>, vector<4x8x1xf32>,
      %51 = arith.truncf %44 : vector<4x8x16xf32> to vector<4x8x16xbf16>
      %cst_28 = arith.constant dense<0.000000e+00> : vector<4x8x8xf32>
      %52 = tpu.matmul %51, %25, %cst_28 {dimension_numbers = #tpu.dot_dimension_numbers<[2], [1], [1], [2], [0, 0, 0, 1, 1, 2], [0], [0]>} : vector<4x8x16xbf16>, vector<4x16x8xbf16>, vector<4x8x8xf32> -> vector<4x8x8xf32>
      %c0_29 = arith.constant 0 : index
      %c0_30 = arith.constant 0 : index
      %c0_31 = arith.constant 0 : index
      %53 = vector.load %arg9[%c0_29, %c0_30, %c0_31] : memref<4x8x8xf32, #tpu.memory_space<vmem>>, vector<4x8x8xf32>
      %54 = vector.broadcast %41 : vector<4x8x1xf32> to vector<4x8x8xf32>
      %55 = arith.mulf %54, %53 : vector<4x8x8xf32>
      %56 = arith.addf %55, %52 : vector<4x8x8xf32>
      %c0_32 = arith.constant 0 : index
      %c0_33 = arith.constant 0 : index
      %c0_34 = arith.constant 0 : index
      %57 = vector.load %arg9[%c0_32, %c0_33, %c0_34] : memref<4x8x8xf32, #tpu.memory_space<vmem>>, vector<4x8x8xf32>
      tpu.vector_store %arg9[%c0_32, %c0_33, %c0_34], %56 {strides = array<i32>} : memref<4x8x8xf32, #tpu.memory_space<vmem>>, vector<4x8x8xf32>,
      %c0_35 = arith.constant 0 : index
      %c0_36 = arith.constant 0 : index
      %c0_37 = arith.constant 0 : index
      %58 = vector.load %arg7[%c0_35, %c0_36, %c0_37] : memref<4x8x1xf32, #tpu.memory_space<vmem>>, vector<4x8x1xf32>
      tpu.vector_store %arg7[%c0_35, %c0_36, %c0_37], %39 {strides = array<i32>} : memref<4x8x1xf32, #tpu.memory_space<vmem>>, vector<4x8x1xf32>,
    } else {
    }
    %c0_i32_2 = arith.constant 0 : i32
    %9 = arith.cmpi eq, %arg1, %c0_i32_2 : i32
    %10 = arith.extui %9 : i1 to i32
    %c0_i32_3 = arith.constant 0 : i32
    %11 = arith.cmpi ne, %10, %c0_i32_3 : i32
    scf.if %11 {
      %c0 = arith.constant 0 : index
      %c0_4 = arith.constant 0 : index
      %c0_5 = arith.constant 0 : index
      %12 = vector.load %arg8[%c0, %c0_4, %c0_5] : memref<4x8x1xf32, #tpu.memory_space<vmem>>, vector<4x8x1xf32>
      %cst = arith.constant 0.000000e+00 : f32
      %13 = vector.broadcast %cst : f32 to vector<4x8x1xf32>
      %14 = arith.cmpf ogt, %12, %13 : vector<4x8x1xf32>
      %cst_6 = arith.constant 1.000000e+00 : f32
      %15 = vector.broadcast %cst_6 : f32 to vector<4x8x1xf32>
      %16 = arith.select %14, %12, %15 : vector<4x8x1xi1>, vector<4x8x1xf32>
      %c0_7 = arith.constant 0 : index
      %c0_8 = arith.constant 0 : index
      %c0_9 = arith.constant 0 : index
      %17 = vector.load %arg9[%c0_7, %c0_8, %c0_9] : memref<4x8x8xf32, #tpu.memory_space<vmem>>, vector<4x8x8xf32>
      %18 = tpu.reciprocal %16 {approx = true} : vector<4x8x1xf32> -> vector<4x8x1xf32>
      %19 = vector.broadcast %18 : vector<4x8x1xf32> to vector<4x8x8xf32>
      %20 = arith.mulf %17, %19 : vector<4x8x8xf32>
      %cst_10 = arith.constant 0.000000e+00 : f32
      %21 = vector.shape_cast %14 : vector<4x8x1xi1> to vector<4x8x1xi1>
      %22 = vector.broadcast %21 : vector<4x8x1xi1> to vector<4x8x8xi1>
      %23 = vector.broadcast %cst_10 : f32 to vector<4x8x8xf32>
      %24 = arith.select %22, %20, %23 : vector<4x8x8xi1>, vector<4x8x8xf32>
      %25 = tpu.transpose %24, [1, 0, 2] : vector<4x8x8xf32> -> vector<8x4x8xf32>
      %c0_11 = arith.constant 0 : index
      %c0_12 = arith.constant 0 : index
      %c0_13 = arith.constant 0 : index
      %c0_14 = arith.constant 0 : index
      %26 = vector.load %arg6[%c0_11, %c0_12, %c0_13, %c0_14] : memref<1x8x4x8xf32, #tpu.memory_space<vmem>>, vector<1x8x4x8xf32>
      %27 = vector.shape_cast %26 : vector<1x8x4x8xf32> to vector<8x4x8xf32>
      %28 = vector.shape_cast %25 : vector<8x4x8xf32> to vector<1x8x4x8xf32>
      tpu.vector_store %arg6[%c0_11, %c0_12, %c0_13, %c0_14], %28 {strides = array<i32>} : memref<1x8x4x8xf32, #tpu.memory_space<vmem>>, vector<1x8x4x8xf32>,
    } else {
    }
    return
  }
  func.func @transform_0(%arg0: i32, %arg1: i32, %arg2: memref<2xi32, #tpu.memory_space<smem>>) -> (i32, i32, i32, i32) {
    %c0_i32 = arith.constant 0 : i32
    %c0_i32_0 = arith.constant 0 : i32
    %c0_i32_1 = arith.constant 0 : i32
    %c0_i32_2 = arith.constant 0 : i32
    return %arg0, %c0_i32, %c0_i32_0, %c0_i32_1 : i32, i32, i32, i32
  }
  func.func @transform_1(%arg0: i32, %arg1: i32, %arg2: memref<2xi32, #tpu.memory_space<smem>>) -> (i32, i32, i32, i32) {
    %c0_i32 = arith.constant 0 : i32
    %c0_i32_0 = arith.constant 0 : i32
    %c0_i32_1 = arith.constant 0 : i32
    return %arg0, %arg1, %c0_i32, %c0_i32_0 : i32, i32, i32, i32
  }
  func.func @transform_2(%arg0: i32, %arg1: i32, %arg2: memref<2xi32, #tpu.memory_space<smem>>) -> (i32, i32, i32, i32) {
    %c0_i32 = arith.constant 0 : i32
    %c0_i32_0 = arith.constant 0 : i32
    %c0_i32_1 = arith.constant 0 : i32
    return %arg0, %arg1, %c0_i32, %c0_i32_0 : i32, i32, i32, i32
  }
  func.func @transform_3(%arg0: i32, %arg1: i32, %arg2: memref<2xi32, #tpu.memory_space<smem>>) -> (i32, i32, i32, i32) {
    %c0_i32 = arith.constant 0 : i32
    %c0_i32_0 = arith.constant 0 : i32
    %c0_i32_1 = arith.constant 0 : i32
    %c0_i32_2 = arith.constant 0 : i32
    return %arg0, %c0_i32, %c0_i32_0, %c0_i32_1 : i32, i32, i32, i32
  }
}

</mosaic_0001>

<bundles_post_ra>
// kernel: tpu_custom_call.1
= control target key start
LH: loop header
LB: loop body
LE: loop exit
PB: predicated region body
PF: predicated region fallthrough
CT: control target
= control target key end

     0   :  { %s1447_s18 = smov [#allocation6]   ;;  %s1883_s0 = inlined_call_operand.vmem [shape: s32[2], index: 0, kind: input, shape index: {}]   ;;  %s1884_s1 = inlined_call_operand.vmem [shape: f32[2,8,4,8], index: 1, kind: input, shape index: {}]   ;;  %s1885_s2 = inlined_call_operand.vmem [shape: f32[2,16,4,8], index: 2, kind: input, shape index: {}]   ;;  %s1886_s3 = inlined_call_operand.vmem [shape: f32[2,16,4,8], index: 3, kind: input, shape index: {}]   ;;  %s1887_s4 = inlined_call_operand.hbm [shape: f32[2,8,4,8], index: 4, kind: output, shape index: {}]  }
   0x1   :  { %s10_s17 = sshll.u32 %s1883_s0, 4  ;;  %s11_s17 = int_to_ptr.vmem [resolvable:$true] %s10_s17 }
   0x2   :  { %13 = dma.vmem_to_smem %s11_s17, 16, %s1447_s18, [#allocation5] }
   0x3   :  { %1417 = dma.done.wait [#allocation5], 16 }
   0x4   :  { %1418 = vsyncadd [#allocation5], 4294967280 }
   0x5   :  { %16 = sfence }
   0x6   :  { %17 = vsyncpa [#allocation8], 0 }
   0x7   :  { %19 = vsyncpa [#allocation8 + $0x1], 0  ;;  %s1486_s19 = smov 0   ;;  %s1488_s20 = smov 0  }
   0x8   :  { %s1490_s21 = smov 0   ;;  %s1492_s22 = smov 0  }
   0x9   :  { %s1494_s23 = smov 0   ;;  %s1496_s24 = smov 0  }
   0xa LB: > { %s1226_s0 = sadd.s32 4294967295, %s1445_s24   ;;  %s1227_s25 = sadd.s32 4294967294, %s1445_s24   ;;  %s1445_s24 = sphi %s1496_s24, %s25_s24   ;;  %s1441_s23 = sphi %s1494_s23, %s1896_s23   ;;  %s1437_s22 = sphi %s1492_s22, %s1895_s22   ;;  %s1433_s21 = sphi %s1490_s21, %s1894_s21   ;;  %s1429_s20 = sphi %s1488_s20, %s1893_s20   ;;  %s1425_s19 = sphi %s1486_s19, %s1892_s19  }
   0xb   : > { %s37_s26 = sadd.s32 1, %s1441_s23  ;;  %s126_s27 = sadd.s32 1, %s1433_s21 }
   0xc   : > { %p39_p0 = scmp.ge.s32.totalorder %s37_s26, 2  ;;  %p136_p1 = scmp.ne.s32.totalorder %s1433_s21, %s1429_s20 }
   0xd   : > { %p137_p2 = scmp.eq.s32.totalorder %s1226_s0, 1  ;;  %p142_p3 = scmp.ne.s32.totalorder %s1429_s20, %s1425_s19 }
   0xe   : > { %s1898_s26 = smov (%p39_p0, %s37_s26), 0  ;;  %p143_p5 = scmp.eq.s32.totalorder %s1227_s25, 1 }
   0xf   : > { %p1526_p4 = por %p137_p2, %p136_p1  ;;  %s123_s29 = ssub.s32 %s1441_s23, %s1898_s26 }
  0x10   : > { %p1230_p6 = scmp.ge.s32.totalorder %s1445_s24, 1  ;;  %p124_p7 = scmp.eq.s32.totalorder %s123_s29, 0 }
  0x11   : > { %p1533_p8 = por %p143_p5, %p142_p3  ;;  %p195_p9 = scmp.lt.s32.totalorder %s1445_s24, 3 }
  0x12   : > { %s1539_s5 = scalar_select %p124_p7, %s1433_s21, %s126_s27  }
  0x13   : > { %p196_p10 = pnand %p1230_p6, %p195_p9 }
  0x14   : > { %s234_s6 = sand.u32 (!%p196_p10), 1, %s1429_s20   ;;  %p237_p11 = scmp.lt.s32.totalorder (!%p196_p10), %s1437_s22, 1 }
  0x15   : > { %199 = sbr.rel (%p196_p10) target bundleno = 759 (0x2f7), region = 32  ;;  %s1231_s7 = sshll.u32 (!%p196_p10), %s234_s6, 5 }
  0x16   : > { %s1546_s8 = sld [smem:[#allocation6 + %s1437_s22]] (!%p196_p10)  ;;  %s1576_s27 = scalar_lea.vmem (!%p196_p10), [#allocation7], %s1231_s7 }
  0x1a   : > { %vm269_vm0 = vcmask 7168   ;;  %v1448_v0 = vmov -inf   ;;  %s238_s9 = scalar_select %p237_p11, %s1437_s22, 1  ;;  %v1449_v1 = vmov 0.0   ;;  %vm278_vm1 = vcmask 64512  }
  0x1b   : > { %270 = vst.msk [vmem:[#allocation2] sm:$0xff] %vm269_vm0, %v1448_v0 }
  0x1c   : > { %271 = vst.msk [vmem:[#allocation2 + $0x8] sm:$0xff] %vm269_vm0, %v1448_v0  ;;  %s1253_s10 = sshll.u32 %s238_s9, 5  ;;  %s1254_s11 = sshll.u32 %s238_s9, 6 }
  0x1d   : > { %272 = vst.msk [vmem:[#allocation2 + $0x10] sm:$0xff] %vm269_vm0, %v1448_v0  ;;  %s1557_s14 = scalar_lea.vmem %s1884_s1, %s1253_s10  ;;  %s1562_s17 = scalar_lea.vmem %s1885_s2, %s1254_s11 }
  0x1e   : > { %273 = vst.msk [vmem:[#allocation2 + $0x18] sm:$0xff] %vm269_vm0, %v1448_v0  ;;  %s1568_s25 = scalar_lea.vmem %s1886_s3, %s1254_s11  ;;  %p1239_p12 = scmp.le.s32.totalorder %s1546_s8, 0 }
  0x1f   : > { %274 = vst.msk [vmem:[#allocation3] sm:$0xff] %vm269_vm0, %v1449_v1 }
  0x20   : > { %275 = vst.msk [vmem:[#allocation3 + $0x8] sm:$0xff] %vm269_vm0, %v1449_v1 }
  0x21   : > { %276 = vst.msk [vmem:[#allocation3 + $0x10] sm:$0xff] %vm269_vm0, %v1449_v1 }
  0x22   : > { %277 = vst.msk [vmem:[#allocation3 + $0x18] sm:$0xff] %vm269_vm0, %v1449_v1  ;;  %286 = sbr.rel (%p1239_p12) target bundleno = 596 (0x254), region = 40 }
  0x23   : > { %279 = vst.msk [vmem:[#allocation4] sm:$0xff] %vm278_vm1, %v1449_v1 }
  0x24   : > { %280 = vst.msk [vmem:[#allocation4 + $0x8] sm:$0xff] %vm278_vm1, %v1449_v1 }
  0x25   : > { %281 = vst.msk [vmem:[#allocation4 + $0x10] sm:$0xff] %vm278_vm1, %v1449_v1 }
  0x26   : > { %282 = vst.msk [vmem:[#allocation4 + $0x18] sm:$0xff] %vm278_vm1, %v1449_v1 }
  0x27   : > { %v1450_v2 = vmov 1983009808   ;;  %v1451_v4 = vmov 1934713408   ;;  %vm296_vm2 = vcmask 1047556   ;;  %vm745_vm4 = vcmask 130048  }
  0x28   : > { %v299_v3 = vunpack.c.l.s4 %v1450_v2  ;;  %v325_v5 = vunpack.c.l.s4 %v1451_v4  ;;  %v362_v6 = vld [vmem:[%s1562_s17 + $0x8] sm:$0xf]  ;;  %v363_v7 = vld [vmem:[%s1562_s17 + $0xc] sm:$0xf]  ;;  %v360_v8 = vld [vmem:[%s1562_s17] sm:$0xf] }
  0x29   : > { %v361_v9 = vld [vmem:[%s1562_s17 + $0x4] sm:$0xf]  ;;  %v364_v10 = vld [vmem:[%s1562_s17 + $0x10] sm:$0xf]  ;;  %v366_v11 = vld [vmem:[%s1562_s17 + $0x18] sm:$0xf] }
  0x2a   : > { %v367_v12 = vld [vmem:[%s1562_s17 + $0x1c] sm:$0xf]  ;;  %v365_v13 = vld [vmem:[%s1562_s17 + $0x14] sm:$0xf]  ;;  %v370_v14 = vld [vmem:[%s1562_s17 + $0x28] sm:$0xf]  ;;  %v1589_v16 = vunpack.c.0.s8 %v299_v3  ;;  %v1591_v17 = vunpack.c.0.s8 %v325_v5 }
  0x2b   : > { %v371_v15 = vld [vmem:[%s1562_s17 + $0x2c] sm:$0xf]  ;;  %v368_v18 = vld [vmem:[%s1562_s17 + $0x20] sm:$0xf]  ;;  %v369_v19 = vld [vmem:[%s1562_s17 + $0x24] sm:$0xf] }
  0x2c   : > { %v372_v20 = vld [vmem:[%s1562_s17 + $0x30] sm:$0xf]  ;;  %v374_v21 = vld [vmem:[%s1562_s17 + $0x38] sm:$0xf]  ;;  %v375_v22 = vld [vmem:[%s1562_s17 + $0x3c] sm:$0xf] }
  0x2d   : > { %v376_v23 = vrot.slane %v362_v6, 4  ;;  %v382_v24 = vrot.slane %v363_v7, 4  ;;  %v388_v25 = vrot.slane %v366_v11, 4  ;;  %v394_v26 = vrot.slane %v367_v12, 4  ;;  %v373_v27 = vld [vmem:[%s1562_s17 + $0x34] sm:$0xf] }
  0x2e   : > { %v432_v28 = vrot.slane %v370_v14, 4  ;;  %v438_v29 = vrot.slane %v371_v15, 4  ;;  %v444_v30 = vrot.slane %v374_v21, 4  ;;  %v450_v31 = vrot.slane %v375_v22, 4  ;;  %v289_v0 = vld [vmem:[%s1557_s14 + $0x8] sm:$0xf] }
  0x2f   : > { %v377_v32 = vsel %vm296_vm2, %v376_v23, %v360_v8  ;;  %v383_v33 = vsel %vm296_vm2, %v382_v24, %v361_v9  ;;  %v389_v34 = vsel %vm296_vm2, %v388_v25, %v364_v10  ;;  %v395_v35 = vsel %vm296_vm2, %v394_v26, %v365_v13  ;;  %v287_v9 = vld [vmem:[%s1557_s14] sm:$0xf]  ;;  %v290_v10 = vld [vmem:[%s1557_s14 + $0xc] sm:$0xf]  ;;  %v288_v23 = vld [vmem:[%s1557_s14 + $0x4] sm:$0xf] }
  0x30   : > { %v381_v36 = vperm.slane %v377_v32, %v1589_v16  ;;  %v387_v37 = vperm.slane %v383_v33, %v1589_v16  ;;  %v393_v38 = vperm.slane %v389_v34, %v1589_v16  ;;  %v399_v39 = vperm.slane %v395_v35, %v1589_v16  ;;  %v293_v24 = vld [vmem:[%s1557_s14 + $0x18] sm:$0xf]  ;;  %v291_v35 = vld [vmem:[%s1557_s14 + $0x10] sm:$0xf] }
  0x31   : > { %v433_v40 = vsel %vm296_vm2, %v432_v28, %v368_v18  ;;  %v439_v41 = vsel %vm296_vm2, %v438_v29, %v369_v19  ;;  %v445_v42 = vsel %vm296_vm2, %v444_v30, %v372_v20  ;;  %v451_v43 = vsel %vm296_vm2, %v450_v31, %v373_v27  ;;  %v294_v31 = vld [vmem:[%s1557_s14 + $0x1c] sm:$0xf] }
  0x32   : > { %v400_v44 = vrot.slane %v387_v37, 4  ;;  %v412_v45 = vrot.slane %v399_v39, 4  ;;  %v437_v46 = vperm.slane %v433_v40, %v1589_v16  ;;  %v443_v47 = vperm.slane %v439_v41, %v1589_v16 }
  0x33   : > { %v449_v48 = vperm.slane %v445_v42, %v1589_v16  ;;  %v455_v49 = vperm.slane %v451_v43, %v1589_v16  ;;  %v402_v50 = vrot.slane %v381_v36, 4  ;;  %v414_v51 = vrot.slane %v393_v38, 4 }
  0x34   : > { %v401_v52 = vsel %vm296_vm2, %v400_v44, %v381_v36  ;;  %v413_v53 = vsel %vm296_vm2, %v412_v45, %v393_v38  ;;  %v456_v54 = vrot.slane %v443_v47, 4  ;;  %v458_v55 = vrot.slane %v437_v46, 4 }
  0x35   : > { %v407_v56 = vperm.slane %v401_v52, %v1591_v17  ;;  %v419_v57 = vperm.slane %v413_v53, %v1591_v17  ;;  %v468_v58 = vrot.slane %v455_v49, 4  ;;  %v403_v59 = vsel %vm296_vm2, %v387_v37, %v402_v50 }
  0x36   : > { %v457_v60 = vsel %vm296_vm2, %v456_v54, %v437_v46  ;;  %v1622_v61 = vperm.slane %v403_v59, %v1591_v17  ;;  %v415_v62 = vsel %vm296_vm2, %v399_v39, %v414_v51  ;;  %v459_v63 = vsel %vm296_vm2, %v443_v47, %v458_v55  ;;  %v292_v39 = vld [vmem:[%s1557_s14 + $0x14] sm:$0xf] }
  0x37   : > { %v424_v1 = vrot.slane %v419_v57, 4  ;;  %v463_v2 = vperm.slane %v457_v60, %v1591_v17  ;;  %v469_v3 = vsel %vm296_vm2, %v468_v58, %v449_v48  ;;  %v426_v4 = vrot.slane %v407_v56, 4 }
  0x38   : > { %v475_v5 = vperm.slane %v469_v3, %v1591_v17  ;;  %v1631_v6 = vperm.slane %v415_v62, %v1591_v17  ;;  %v1634_v7 = vperm.slane %v459_v63, %v1591_v17  ;;  %v470_v8 = vrot.slane %v449_v48, 4 }
  0x39   : > { %v425_v11 = vsel %vm296_vm2, %v424_v1, %v407_v56  ;;  %v427_v12 = vsel %vm296_vm2, %v419_v57, %v426_v4  ;;  %v482_v13 = vrot.slane %v463_v2, 4  ;;  %v295_v14 = vrot.slane %v289_v0, 4 }
  0x3a   : > { %v480_v15 = vrot.slane %v475_v5, 4  ;;  %v488_v18 = vpack.c.bf16 %v425_v11, %v425_v11  ;;  %v490_v19 = vpack.c.bf16 %v427_v12, %v427_v12  ;;  %v428_v20 = vrot.slane %v1631_v6, 4 }
  0x3b   : > { %v483_v21 = vsel %vm296_vm2, %v475_v5, %v482_v13  ;;  %v471_v22 = vsel %vm296_vm2, %v455_v49, %v470_v8  ;;  %v297_v25 = vsel %vm296_vm2, %v295_v14, %v287_v9  ;;  %v302_v26 = vrot.slane %v290_v10, 4 }
  0x3c   : > { %v481_v27 = vsel %vm296_vm2, %v480_v15, %v463_v2  ;;  %v634_v28 = vunpack.c.l.b16 %v488_v18  ;;  %v491_v29 = vpack.c.bf16 %v483_v21, %v483_v21  ;;  %v659_v30 = vunpack.c.l.b16 %v490_v19 }
  0x3d   : > { %v489_v32 = vpack.c.bf16 %v481_v27, %v481_v27  ;;  %v429_v33 = vsel %vm296_vm2, %v428_v20, %v1622_v61  ;;  %v479_v34 = vperm.slane %v471_v22, %v1591_v17  ;;  %v301_v36 = vperm.slane %v297_v25, %v1589_v16 }
  0x3e   : > { %v660_v37 = vunpack.c.l.b16 %v491_v29  ;;  %v492_v38 = vpack.c.bf16 %v429_v33, %v429_v33  ;;  %v303_v40 = vsel %vm296_vm2, %v302_v26, %v288_v23  ;;  %v308_v41 = vrot.slane %v293_v24, 4 }
  0x3f   : > { %v635_v42 = vunpack.c.l.b16 %v489_v32  ;;  %v484_v43 = vrot.slane %v479_v34, 4  ;;  %v307_v44 = vperm.slane %v303_v40, %v1589_v16  ;;  %v314_v45 = vrot.slane %v294_v31, 4 }
  0x40   : > { %v661_v46 = vpack.c.b16 %v660_v37, %v659_v30  ;;  %v683_v47 = vunpack.c.l.b16 %v492_v38  ;;  %v309_v48 = vsel %vm296_vm2, %v308_v41, %v291_v35  ;;  %v322_v49 = vrot.slane %v301_v36, 4 }
  0x41   : > { %v636_v50 = vpack.c.b16 %v635_v42, %v634_v28  ;;  %v485_v51 = vsel %vm296_vm2, %v484_v43, %v1634_v7  ;;  %v313_v52 = vperm.slane %v309_v48, %v1589_v16  ;;  %v315_v53 = vsel %vm296_vm2, %v314_v45, %v292_v39  ;;  %v509_v39 = vld [vmem:[%s1568_s25 + $0x34] sm:$0xf] }
  0x42   : > { %v666_v54 = vsel %vm278_vm1, %v661_v46, 0  ;;  %v493_v55 = vpack.c.bf16 %v485_v51, %v485_v51  ;;  %v319_v56 = vperm.slane %v315_v53, %v1589_v16  ;;  %v320_v57 = vrot.slane %v307_v44, 4 }
  0x43   : > { %v642_v58 = vsel %vm278_vm1, %v636_v50, 0  ;;  %675 = vmatpush.bf16.xpose.msra.mxu1 %v666_v54  ;;  %v323_v59 = vsel %vm296_vm2, %v307_v44, %v322_v49  ;;  %v334_v60 = vrot.slane %v313_v52, 4  ;;  %v430_v62 = vrot.slane %v1622_v61, 4 }
  0x44   : > { %651 = vmatpush.bf16.xpose.msra.mxu0 %v642_v58  ;;  %v684_v63 = vunpack.c.l.b16 %v493_v55  ;;  %v321_v0 = vsel %vm296_vm2, %v320_v57, %v301_v36  ;;  %v332_v1 = vrot.slane %v319_v56, 4  ;;  %v331_v2 = vperm.slane %v323_v59, %v1591_v17  ;;  %v741_v57 = vld [vmem:[#allocation2] sm:$0xff] }
  0x45   : > { %v327_v3 = vperm.slane %v321_v0, %v1591_v17  ;;  %v335_v4 = vsel %vm296_vm2, %v319_v56, %v334_v60  ;;  %v431_v5 = vsel %vm296_vm2, %v1631_v6, %v430_v62  ;;  %v486_v8 = vrot.slane %v1634_v7, 4  ;;  %v743_v62 = vld [vmem:[#allocation2 + $0x10] sm:$0xff]  ;;  %v742_v0 = vld [vmem:[#allocation2 + $0x8] sm:$0xff] }
  0x46   : > { %v685_v9 = vpack.c.b16 %v684_v63, %v683_v47  ;;  %v333_v10 = vsel %vm296_vm2, %v332_v1, %v313_v52  ;;  %v343_v61 = vperm.slane %v335_v4, %v1591_v17  ;;  %v494_v11 = vpack.c.bf16 %v431_v5, %v431_v5 }
  0x47   : > { %v339_v12 = vperm.slane %v333_v10, %v1591_v17  ;;  %v346_v13 = vrot.slane %v327_v3, 4  ;;  %v487_v14 = vsel %vm296_vm2, %v479_v34, %v486_v8  ;;  %v350_v15 = vrot.slane %v331_v2, 4  ;;  %v744_v10 = vld [vmem:[#allocation2 + $0x18] sm:$0xff] }
  0x48   : > { %v690_v18 = vsel %vm278_vm1, %v685_v9, 0  ;;  %v348_v19 = vrot.slane %v343_v61, 4  ;;  %v495_v20 = vpack.c.bf16 %v487_v14, %v487_v14  ;;  %v707_v21 = vunpack.c.l.b16 %v494_v11 }
  0x49   : > { %699 = vmatpush.bf16.xpose.msra.mxu2 %v690_v18  ;;  %v344_v6 = vrot.slane %v339_v12, 4  ;;  %v347_v7 = vsel %vm296_vm2, %v339_v12, %v346_v13  ;;  %v351_v27 = vsel %vm296_vm2, %v343_v61, %v350_v15  ;;  %v729_v36 = vlaneseq }
  0x4a   : > { %v353_v22 = vmul.f32 0.35355338, %v347_v7  ;;  %v349_v23 = vsel %vm296_vm2, %v348_v19, %v331_v2  ;;  %v708_v24 = vunpack.c.l.b16 %v495_v20  ;;  %v355_v34 = vmul.f32 0.35355338, %v351_v27  ;;  %v508_v27 = vld [vmem:[%s1568_s25 + $0x30] sm:$0xf] }
  0x4b   : > { %v345_v25 = vsel %vm296_vm2, %v344_v6, %v327_v3  ;;  %v354_v26 = vmul.f32 0.35355338, %v349_v23  ;;  %v730_v37 = vand.u32 127, %v729_v36  ;;  %v733_v38 = vstv %s1546_s8  ;;  %v510_v6 = vld [vmem:[%s1568_s25 + $0x38] sm:$0xf] }
  0x4c   : > { %v352_v28 = vmul.f32 0.35355338, %v345_v25  ;;  %v357_v29 = vpack.c.bf16 %v353_v22, %v353_v22  ;;  %v709_v30 = vpack.c.b16 %v708_v24, %v707_v21  ;;  %v359_v35 = vpack.c.bf16 %v355_v34, %v355_v34  ;;  %v502_v21 = vld [vmem:[%s1568_s25 + $0x18] sm:$0xf]  ;;  %v498_v23 = vld [vmem:[%s1568_s25 + $0x8] sm:$0xf] }
  0x4d   : > { %v358_v31 = vpack.c.bf16 %v354_v26, %v354_v26  ;;  %vm1688_vm3 = vcmp.lt.s32.totalorder %v730_v37, %v733_v38  ;;  %v1452_v56 = vmov 0   ;;  %v524_v7 = vrot.slane %v502_v21, 4  ;;  %v500_v24 = vld [vmem:[%s1568_s25 + $0x10] sm:$0xf]  ;;  %v503_v25 = vld [vmem:[%s1568_s25 + $0x1c] sm:$0xf] }
  0x4e   : > { %v356_v32 = vpack.c.bf16 %v352_v28, %v352_v28  ;;  %1241 = vmatmul.msk.bf16.vlgmr.msra.gmra.mxu1 %vm278_vm1, %v357_v29  ;;  %v714_v33 = vsel %vm278_vm1, %v709_v30, 0  ;;  %1324 = vset.pattern.permute.xlu0 %v1452_v56  ;;  %v580_v22 = vrot.slane %v510_v6, 4  ;;  %v506_v26 = vld [vmem:[%s1568_s25 + $0x28] sm:$0xf]  ;;  %v496_v29 = vld [vmem:[%s1568_s25] sm:$0xf] }
  0x4f   : > { %723 = vmatpush.bf16.xpose.msra.mxu3 %v714_v33  ;;  %1323 = vset.pattern.permute.xlu2 %v1452_v56  ;;  %v525_v28 = vsel %vm296_vm2, %v524_v7, %v500_v24  ;;  %v499_v30 = vld [vmem:[%s1568_s25 + $0xc] sm:$0xf]  ;;  %v501_v34 = vld [vmem:[%s1568_s25 + $0x14] sm:$0xf]  ;;  %v497_v38 = vld [vmem:[%s1568_s25 + $0x4] sm:$0xf] }
  0x50   : > { %1240 = vmatmul.msk.bf16.vlgmr.msra.gmra.mxu0 %vm278_vm1, %v356_v32  ;;  %1242 = vmatmul.msk.bf16.vlgmr.msra.gmra.mxu2 %vm278_vm1, %v358_v31  ;;  %v511_v31 = vld [vmem:[%s1568_s25 + $0x3c] sm:$0xf]  ;;  %v529_v32 = vperm.slane %v525_v28, %v1589_v16  ;;  %v581_v33 = vsel %vm296_vm2, %v580_v22, %v508_v27  ;;  %v507_v36 = vld [vmem:[%s1568_s25 + $0x2c] sm:$0xf] }
  0x51   : > { %1325 = vset.pattern.permute.xlu1 %v1452_v56  ;;  %v585_v37 = vperm.slane %v581_v33, %v1589_v16 }
  0x56   : > { %1243 = vmatmul.msk.bf16.vlgmr.msra.gmra.mxu3 %vm278_vm1, %v359_v35  ;;  %v504_v35 = vld [vmem:[%s1568_s25 + $0x20] sm:$0xf] }
  0xcb   : > { %v677_v40 = vpop.f32.mrf.mxu1 }
  0xcc   : > { %v1700_v44 = vsel %vm1688_vm3, %v677_v40, -1e+30  ;;  %v512_v40 = vrot.slane %v498_v23, 4 }
  0xcd   : > { %v653_v41 = vpop.f32.mrf.mxu0  ;;  %v749_v50 = vsel %vm745_vm4, %v1700_v44, -inf }
  0xce   : > { %v1694_v42 = vsel %vm1688_vm3, %v653_v41, -1e+30  ;;  %v518_v41 = vrot.slane %v499_v30, 4 }
  0xcf   : > { %v746_v43 = vsel %vm745_vm4, %v1694_v42, -inf }
  0xd0   : > { %747 = vmax.xlane.f32.xlu1 %v746_v43  ;;  %v505_v43 = vld [vmem:[%s1568_s25 + $0x24] sm:$0xf] }
  0xd3   : > { %v701_v45 = vpop.f32.mrf.mxu2  ;;  %v679_v46 = vpop.f32.mrf.mxu1 }
  0xd4   : > { %v1704_v47 = vsel %vm1688_vm3, %v701_v45, -1e+30  ;;  %v530_v45 = vrot.slane %v503_v25, 4  ;;  %v550_v46 = vrot.slane %v529_v32, 4 }
  0xd5   : > { %v655_v48 = vpop.f32.mrf.mxu0  ;;  %v752_v49 = vsel %vm745_vm4, %v1704_v47, -inf }
  0xd6   : > { %753 = vmax.xlane.f32.xlu0 %v752_v49  ;;  %v568_v48 = vrot.slane %v506_v26, 4  ;;  %v574_v49 = vrot.slane %v507_v36, 4 }
  0xd8   : > { %750 = vmax.xlane.f32.xlu1 %v749_v50  ;;  %v513_v50 = vsel %vm296_vm2, %v512_v40, %v496_v29 }
  0xd9   : > { %v725_v51 = vpop.f32.mrf.mxu3 }
  0xda   : > { %v1712_v52 = vsel %vm1688_vm3, %v725_v51, -1e+30  ;;  %v519_v51 = vsel %vm296_vm2, %v518_v41, %v497_v38 }
  0xdb   : > { %v755_v53 = vsel %vm745_vm4, %v1712_v52, -inf  ;;  %v703_v54 = vpop.f32.mrf.mxu2  ;;  %v523_v56 = vperm.slane %v519_v51, %v1589_v16 }
  0xdc   : > { %v606_v54 = vrot.slane %v585_v37, 4 }
  0xdd   : > { %v536_v38 = vrot.slane %v523_v56, 4 }
  0xde   : > { %756 = vmax.xlane.f32.xlu0 %v755_v53  ;;  %v586_v53 = vrot.slane %v511_v31, 4 }
  0xe1   : > { %v727_v55 = vpop.f32.mrf.mxu3 }
  0xe2   : > { %v517_v55 = vperm.slane %v513_v50, %v1589_v16 }
 0x143   : > { %v748_v58 = vpop.xlane.xlu1 %747 }
 0x144   : > { %v758_v59 = vmax.f32 %v741_v57, %v748_v58  ;;  %v569_v58 = vsel %vm296_vm2, %v568_v48, %v504_v35 }
 0x146   : > { %963 = vst.msk [vmem:[#allocation2] sm:$0xff] %vm269_vm0, %v758_v59  ;;  %776 = vperm.xlu0 %1324, %v758_v59   ;;  %v762_v60 = vsub.f32 %v741_v57, %v758_v59  ;;  %v531_v57 = vsel %vm296_vm2, %v530_v45, %v501_v34  ;;  %v537_v45 = vsel %vm296_vm2, %v536_v38, %v517_v55  ;;  %v809_v38 = vld [vmem:[#allocation3 + $0x18] sm:$0xff] }
 0x147   : > { %v535_v59 = vperm.slane %v531_v57, %v1589_v16 }
 0x148   : > { %v766_v2 = vmul.f32 1.442695, %v762_v60  ;;  %v573_v60 = vperm.slane %v569_v58, %v1589_v16 }
 0x149   : > { %v754_v63 = vpop.xlane.xlu0 %753  ;;  %v548_v34 = vrot.slane %v535_v59, 4 }
 0x14a   : > { %v760_v1 = vmax.f32 %v743_v62, %v754_v63  ;;  %1326 = vpow2.f32 %v766_v2  ;;  %v587_v63 = vsel %vm296_vm2, %v586_v53, %v509_v39 }
 0x14b   : > { %v751_v3 = vpop.xlane.xlu1 %750  ;;  %v591_v2 = vperm.slane %v587_v63, %v1589_v16  ;;  %v549_v39 = vsel %vm296_vm2, %v548_v34, %v529_v32 }
 0x14c   : > { %v764_v4 = vsub.f32 %v743_v62, %v760_v1  ;;  %965 = vst.msk [vmem:[#allocation2 + $0x10] sm:$0xff] %vm269_vm0, %v760_v1  ;;  %v759_v5 = vmax.f32 %v742_v0, %v751_v3  ;;  %786 = vperm.xlu2 %1323, %v760_v1   ;;  %v575_v62 = vsel %vm296_vm2, %v574_v49, %v505_v43 }
 0x14d   : > { %v579_v1 = vperm.slane %v575_v62, %v1589_v16  ;;  %v551_v3 = vsel %vm296_vm2, %v535_v59, %v550_v46  ;;  %v604_v35 = vrot.slane %v591_v2, 4  ;;  %v555_v41 = vperm.slane %v549_v39, %v1591_v17 }
 0x14e   : > { %v770_v8 = vmul.f32 1.442695, %v764_v4  ;;  %964 = vst.msk [vmem:[#allocation2 + $0x8] sm:$0xff] %vm269_vm0, %v759_v5  ;;  %781 = vperm.xlu1 %1325, %v759_v5   ;;  %v763_v9 = vsub.f32 %v742_v0, %v759_v5  ;;  %v538_v0 = vrot.slane %v517_v55, 4  ;;  %v594_v4 = vrot.slane %v573_v60, 4 }
 0x14f   : > { %v592_v40 = vrot.slane %v579_v1, 4  ;;  %v605_v43 = vsel %vm296_vm2, %v604_v35, %v585_v37  ;;  %v543_v49 = vperm.slane %v537_v45, %v1591_v17  ;;  %v560_v50 = vrot.slane %v555_v41, 4  ;;  %v806_v45 = vld [vmem:[#allocation3] sm:$0xff] }
 0x150   : > { %1328 = vpow2.f32 %v770_v8  ;;  %v768_v12 = vmul.f32 1.442695, %v763_v9  ;;  %v1720_v13 = vpop.eup %1326  ;;  %v539_v5 = vsel %vm296_vm2, %v523_v56, %v538_v0  ;;  %v559_v8 = vperm.slane %v551_v3, %v1591_v17 }
 0x151   : > { %v757_v61 = vpop.xlane.xlu0 %756  ;;  %v607_v9 = vsel %vm296_vm2, %v591_v2, %v606_v54  ;;  %v593_v46 = vsel %vm296_vm2, %v592_v40, %v573_v60  ;;  %v611_v48 = vperm.slane %v605_v43, %v1591_v17  ;;  %v561_v32 = vsel %vm296_vm2, %v560_v50, %v543_v49  ;;  %v929_v43 = vld [vmem:[#allocation4 + $0x10] sm:$0xff] }
 0x152   : > { %v761_v11 = vmax.f32 %v744_v10, %v757_v61  ;;  %1330 = vpow2.f32 %v768_v12  ;;  %v595_v61 = vsel %vm296_vm2, %v579_v1, %v594_v4  ;;  %v564_v12 = vrot.slane %v559_v8, 4 }
 0x153   : > { %v599_v51 = vperm.slane %v593_v46, %v1591_v17  ;;  %v616_v53 = vrot.slane %v611_v48, 4  ;;  %v624_v56 = vpack.c.bf16 %v561_v32, %v561_v32  ;;  %v562_v57 = vrot.slane %v543_v49, 4  ;;  %v807_v32 = vld [vmem:[#allocation3 + $0x8] sm:$0xff] }
 0x154   : > { %966 = vst.msk [vmem:[#allocation2 + $0x18] sm:$0xff] %vm269_vm0, %v761_v11  ;;  %791 = vperm.xlu2 %1323, %v761_v11   ;;  %v765_v14 = vsub.f32 %v744_v10, %v761_v11  ;;  %v547_v10 = vperm.slane %v539_v5, %v1591_v17  ;;  %v615_v11 = vperm.slane %v607_v9, %v1591_v17 }
 0x155   : > { %v617_v54 = vsel %vm296_vm2, %v616_v53, %v599_v51  ;;  %v618_v37 = vrot.slane %v599_v51, 4  ;;  %v841_v59 = vunpack.c.l.b16 %v624_v56  ;;  %v563_v55 = vsel %vm296_vm2, %v555_v41, %v562_v57  ;;  %v930_v53 = vld [vmem:[#allocation4 + $0x18] sm:$0xff] }
 0x156   : > { %v1722_v15 = vpop.eup %1328  ;;  %933 = vperm.xlu1 %1325, %v1720_v13   ;;  %v772_v18 = vmul.f32 1.442695, %v765_v14  ;;  %v603_v14 = vperm.slane %v595_v61, %v1591_v17  ;;  %v565_v16 = vsel %vm296_vm2, %v564_v12, %v547_v10  ;;  %v566_v22 = vrot.slane %v547_v10, 4 }
 0x157   : > { %943 = vperm.xlu0 %1324, %v1722_v15   ;;  %v628_v6 = vpack.c.bf16 %v565_v16, %v565_v16  ;;  %v625_v58 = vpack.c.bf16 %v617_v54, %v617_v54  ;;  %v619_v60 = vsel %vm296_vm2, %v611_v48, %v618_v37  ;;  %v626_v63 = vpack.c.bf16 %v563_v55, %v563_v55  ;;  %v927_v54 = vld [vmem:[#allocation4] sm:$0xff] }
 0x158   : > { %v1726_v19 = vpop.eup %1330  ;;  %1332 = vpow2.f32 %v772_v18  ;;  %v620_v18 = vrot.slane %v615_v11, 4  ;;  %v622_v23 = vrot.slane %v603_v14, 4  ;;  %v567_v26 = vsel %vm296_vm2, %v559_v8, %v566_v22 }
 0x159   : > { %v885_v24 = vunpack.c.l.b16 %v628_v6  ;;  %v630_v28 = vpack.c.bf16 %v567_v26, %v567_v26  ;;  %v842_v62 = vunpack.c.l.b16 %v625_v58  ;;  %v627_v0 = vpack.c.bf16 %v619_v60, %v619_v60 }
 0x15a   : > { %v621_v21 = vsel %vm296_vm2, %v620_v18, %v603_v14  ;;  %v623_v27 = vsel %vm296_vm2, %v615_v11, %v622_v23  ;;  %v863_v2 = vunpack.c.l.b16 %v626_v63  ;;  %v810_v49 = vmul.f32 %v1720_v13, %v806_v45  ;;  %v928_v63 = vld [vmem:[#allocation4 + $0x8] sm:$0xff] }
 0x15b   : > { %v629_v7 = vpack.c.bf16 %v621_v21, %v621_v21  ;;  %v631_v29 = vpack.c.bf16 %v623_v27, %v623_v27  ;;  %v907_v31 = vunpack.c.l.b16 %v630_v28  ;;  %v843_v1 = vpack.c.b16 %v842_v62, %v841_v59 }
 0x15c   : > { %v864_v17 = vunpack.c.l.b16 %v627_v0  ;;  %v811_v37 = vmul.f32 %v1726_v19, %v807_v32 }
 0x15d   : > { %v886_v25 = vunpack.c.l.b16 %v629_v7  ;;  %v908_v33 = vunpack.c.l.b16 %v631_v29  ;;  %855 = vmatpush.bf16.msrb.mxu0 %v843_v1 }
 0x15e   : > { %938 = vperm.xlu1 %1325, %v1726_v19   ;;  %v1729_v20 = vpop.eup %1332  ;;  %v865_v3 = vpack.c.b16 %v864_v17, %v863_v2 }
 0x15f   : > { %v887_v30 = vpack.c.b16 %v886_v25, %v885_v24  ;;  %v909_v36 = vpack.c.b16 %v908_v33, %v907_v31  ;;  %v813_v39 = vmul.f32 %v1729_v20, %v809_v38 }
 0x160   : > { %877 = vmatpush.bf16.msrb.mxu1 %v865_v3 }
 0x161   : > { %899 = vmatpush.bf16.msrb.mxu2 %v887_v30  ;;  %921 = vmatpush.bf16.msrb.mxu3 %v909_v36 }
 0x166   : > { %948 = vperm.xlu1 %1325, %v1729_v20  }
 0x1a6   : > { %v787_v4 = vpop.permute.xlu2 %786 }
 0x1a7   : > { %v796_v5 = vsub.f32 %v1704_v47, %v787_v4 }
 0x1a9   : > { %v802_v8 = vmul.f32 1.442695, %v796_v5 }
 0x1ab   : > { %1334 = vpow2.f32 %v802_v8 }
 0x1ae   : > { %v792_v9 = vpop.permute.xlu2 %791 }
 0x1af   : > { %v797_v10 = vsub.f32 %v1712_v52, %v792_v9 }
 0x1b1   : > { %v1335_v61 = vpop.eup %1334  ;;  %v804_v11 = vmul.f32 1.442695, %v797_v10 }
 0x1b2   : > { %v820_v12 = vsel %vm745_vm4, %v1335_v61, 0.0  ;;  %v837_v14 = vpack.c.bf16 %v1335_v61, %v1335_v61 }
 0x1b3   : > { %1336 = vpow2.f32 %v804_v11  ;;  %821 = vadd.xlane.f32.xlu0 %v820_v12 }
 0x1b4   : > { %1246 = vmatmul.msk.bf16.vlgmr.msrb.gmra.mxu2 %vm745_vm4, %v837_v14 }
 0x1b8   : > { %v777_v18 = vpop.permute.xlu0 %776 }
 0x1b9   : > { %v1337_v16 = vpop.eup %1336  ;;  %v794_v21 = vsub.f32 %v1694_v42, %v777_v18 }
 0x1ba   : > { %v823_v47 = vsel %vm745_vm4, %v1337_v16, 0.0  ;;  %v838_v6 = vpack.c.bf16 %v1337_v16, %v1337_v16 }
 0x1bb   : > { %v798_v7 = vmul.f32 1.442695, %v794_v21  ;;  %824 = vadd.xlane.f32.xlu1 %v823_v47 }
 0x1bc   : > { %1247 = vmatmul.msk.bf16.vlgmr.msrb.gmra.mxu3 %vm745_vm4, %v838_v6 }
 0x1bd   : > { %1338 = vpow2.f32 %v798_v7 }
 0x1c0   : > { %v782_v52 = vpop.permute.xlu1 %781 }
 0x1c1   : > { %v795_v22 = vsub.f32 %v1700_v44, %v782_v52  ;;  %v808_v44 = vld [vmem:[#allocation3 + $0x10] sm:$0xff] }
 0x1c2   : > { %v812_v33 = vmul.f32 %v1722_v15, %v808_v44 }
 0x1c3   : > { %v1339_v23 = vpop.eup %1338  ;;  %v800_v24 = vmul.f32 1.442695, %v795_v22 }
 0x1c4   : > { %v814_v25 = vsel %vm745_vm4, %v1339_v23, 0.0  ;;  %v835_v26 = vpack.c.bf16 %v1339_v23, %v1339_v23 }
 0x1c5   : > { %1340 = vpow2.f32 %v800_v24  ;;  %815 = vadd.xlane.f32.xlu2 %v814_v25 }
 0x1c6   : > { %1244 = vmatmul.msk.bf16.vlgmr.msrb.gmra.mxu0 %vm745_vm4, %v835_v26 }
 0x1c8   : > { %v934_v29 = vpop.permute.xlu1 %933 }
 0x1c9   : > { %v944_v31 = vpop.permute.xlu0 %943  ;;  %v951_v60 = vmul.f32 %v934_v29, %v927_v54 }
 0x1ca   : > { %v953_v46 = vmul.f32 %v944_v31, %v929_v43 }
 0x1cb   : > { %v1341_v42 = vpop.eup %1340 }
 0x1cc   : > { %v817_v27 = vsel %vm745_vm4, %v1341_v42, 0.0  ;;  %v836_v28 = vpack.c.bf16 %v1341_v42, %v1341_v42 }
 0x1cd   : > { %818 = vadd.xlane.f32.xlu2 %v817_v27 }
 0x1ce   : > { %1245 = vmatmul.msk.bf16.vlgmr.msrb.gmra.mxu1 %vm745_vm4, %v836_v28 }
 0x1d0   : > { %v939_v30 = vpop.permute.xlu1 %938 }
 0x1d1   : > { %v952_v1 = vmul.f32 %v939_v30, %v928_v63 }
 0x1d8   : > { %v949_v34 = vpop.permute.xlu1 %948 }
 0x1d9   : > { %v954_v20 = vmul.f32 %v949_v34, %v930_v53 }
 0x226   : > { %v822_v35 = vpop.xlane.xlu0 %821 }
 0x227   : > { %v828_v36 = vadd.f32 %v822_v35, %v812_v33 }
 0x229   : > { %833 = vst.msk [vmem:[#allocation3 + $0x10] sm:$0xff] %vm269_vm0, %v828_v36 }
 0x22e   : > { %v825_v40 = vpop.xlane.xlu1 %824 }
 0x22f   : > { %v829_v41 = vadd.f32 %v825_v40, %v813_v39 }
 0x231   : > { %834 = vst.msk [vmem:[#allocation3 + $0x18] sm:$0xff] %vm269_vm0, %v829_v41 }
 0x237   : > { %v901_v48 = vpop.f32.mrf.mxu2 }
 0x238   : > { %v957_v50 = vadd.f32 %v953_v46, %v901_v48  ;;  %v816_v15 = vpop.xlane.xlu2 %815 }
 0x239   : > { %v826_v51 = vadd.f32 %v816_v15, %v810_v49 }
 0x23a   : > { %961 = vst.msk [vmem:[#allocation4 + $0x10] sm:$0xff] %vm278_vm1, %v957_v50 }
 0x23b   : > { %831 = vst.msk [vmem:[#allocation3] sm:$0xff] %vm269_vm0, %v826_v51 }
 0x23f   : > { %v903_v56 = vpop.f32.mrf.mxu2  ;;  %v923_v57 = vpop.f32.mrf.mxu3 }
 0x240   : > { %v958_v58 = vadd.f32 %v954_v20, %v923_v57  ;;  %v819_v59 = vpop.xlane.xlu2 %818 }
 0x241   : > { %v827_v55 = vadd.f32 %v819_v59, %v811_v37 }
 0x242   : > { %962 = vst.msk [vmem:[#allocation4 + $0x18] sm:$0xff] %vm278_vm1, %v958_v58 }
 0x243   : > { %832 = vst.msk [vmem:[#allocation3 + $0x8] sm:$0xff] %vm269_vm0, %v827_v55  ;;  %v857_v13 = vpop.f32.mrf.mxu0 }
 0x244   : > { %v955_v62 = vadd.f32 %v951_v60, %v857_v13 }
 0x246   : > { %959 = vst.msk [vmem:[#allocation4] sm:$0xff] %vm278_vm1, %v955_v62 }
 0x247   : > { %v925_v0 = vpop.f32.mrf.mxu3 }
 0x24b   : > { %v859_v2 = vpop.f32.mrf.mxu0  ;;  %v879_v17 = vpop.f32.mrf.mxu1 }
 0x24c   : > { %v956_v3 = vadd.f32 %v952_v1, %v879_v17 }
 0x24e   : > { %960 = vst.msk [vmem:[#allocation4 + $0x8] sm:$0xff] %vm278_vm1, %v956_v3 }
 0x253   : > { %v881_v19 = vpop.f32.mrf.mxu1 }
 0x254 PF: > { %v970_v5 = vld [vmem:[#allocation3] sm:$0xff]  ;;  %v1453_v9 = vmov 0   ;;  %v971_v10 = vld [vmem:[#allocation3 + $0x8] sm:$0xff]  ;;  %v1454_v44 = vmov 1983009808   ;;  %vm1039_vm11 = vcmask 1047556  }
 0x255   : > { %v972_v4 = vld [vmem:[#allocation3 + $0x10] sm:$0xff]  ;;  %1344 = vset.pattern.permute.xlu1 %v1453_v9  ;;  %1343 = vset.pattern.permute.xlu0 %v1453_v9  ;;  %vm974_vm6 = vcmp.gt.f32.partialorder %v970_v5, 0.0  ;;  %vm975_vm8 = vcmp.gt.f32.partialorder %v971_v10, 0.0  ;;  %v1044_v33 = vunpack.c.l.s4 %v1454_v44  ;;  %v1455_v46 = vmov 1934713408   ;;  %s1256_s29 = sshll.u32 %s1437_s22, 5 }
 0x256   : > { %v973_v8 = vld [vmem:[#allocation3 + $0x18] sm:$0xff]  ;;  %vm976_vm5 = vcmp.gt.f32.partialorder %v972_v4, 0.0  ;;  %v978_v11 = vsel %vm974_vm6, %v970_v5, 1.0  ;;  %1342 = vset.pattern.permute.xlu2 %v1453_v9  ;;  %v1014_v12 = vsel %vm974_vm6, 1, %v1453_v9  ;;  %v979_v18 = vsel %vm975_vm8, %v971_v10, 1.0  ;;  %s1116_s9 = scalar_lea.hbm %s1887_s4, %s1256_s29  ;;  %s1117_s22 = sshll.u32 %s1576_s27, 4  ;;  %s1118_s22 = int_to_ptr.vmem [resolvable:$true] %s1117_s22 }
 0x257   : > { %v980_v61 = vsel %vm976_vm5, %v972_v4, 1.0  ;;  %vm977_vm7 = vcmp.gt.f32.partialorder %v973_v8, 0.0  ;;  %1019 = vperm.xlu2 %1342, %v1014_v12   ;;  %v1015_v47 = vsel %vm975_vm8, 1, %v1453_v9  ;;  %v1016_v22 = vsel %vm976_vm5, 1, %v1453_v9  ;;  %v982_v42 = vld [vmem:[#allocation4] sm:$0xff]  ;;  %s1119_s10 = sshll.u32 %s1116_s9, 4  ;;  %s1120_s10 = int_to_ptr.hbm [resolvable:$true] %s1119_s10 }
 0x258   : > { %1345 = vrcp.f32 %v980_v61  ;;  %v981_v14 = vsel %vm977_vm7, %v973_v8, 1.0  ;;  %v1017_v52 = vsel %vm977_vm7, 1, %v1453_v9  ;;  %v983_v26 = vld [vmem:[#allocation4 + $0x8] sm:$0xff]  ;;  %v1045_v40 = vunpack.c.0.s8 %v1044_v33  ;;  %s1105_s11 = scalar_lea.sflag [#allocation8], %s234_s6  ;;  %s1379_s12 = sshra.s32 %s1120_s10, 4  ;;  %s1380_s12 = int_to_ptr.hbm [resolvable:$true] %s1379_s12 }
 0x259   : > { %1347 = vrcp.f32 %v978_v11  ;;  %v984_v35 = vld [vmem:[#allocation4 + $0x10] sm:$0xff]  ;;  %v1068_v48 = vunpack.c.l.s4 %v1455_v46  ;;  %vm1095_vm14 = vcmask 60416   ;;  %s1381_s13 = scalar_lea.hbm %s1380_s12, 32  ;;  %s1385_s16 = scalar_lea.hbm %s1887_s4, 64 }
 0x25a   : > { %1349 = vrcp.f32 %v981_v14  ;;  %v985_v34 = vld [vmem:[#allocation4 + $0x18] sm:$0xff]  ;;  %p1382_p13 = scmp.ne.s32.totalorder %s1380_s12, %s1381_s13  ;;  %p1386_p2 = scmp.lt.s32.totalorder %s1380_s12, %s1887_s4 }
 0x25b   : > { %1351 = vrcp.f32 %v979_v18  ;;  %v1069_v37 = vunpack.c.0.s8 %v1068_v48  ;;  %p1387_p3 = scmp.lt.s32.totalorder %s1385_s16, %s1381_s13 }
 0x25c   : > { %p1383_p0 = pnand %p1382_p13, %p1526_p4 }
 0x25d   : > { %p1388_p5 = por %p1387_p3, %p1386_p2 }
 0x25e   : > { %v1346_v16 = vpop.eup %1345  ;;  %p1384_p1 = pneg %p1383_p0 }
 0x25f   : > { %v1348_v21 = vpop.eup %1347  ;;  %1002 = vperm.xlu1 %1344, %v1346_v16   ;;  %1022 = vperm.xlu2 %1342, %v1015_v47  }
 0x260   : > { %992 = vperm.xlu0 %1343, %v1348_v21   ;;  %v1350_v6 = vpop.eup %1349  ;;  %p1389_p6 = pnand %p1388_p5, %p1384_p1 }
 0x261   : > { %v1352_v7 = vpop.eup %1351 }
 0x267   : > { %1007 = vperm.xlu1 %1344, %v1350_v6  }
 0x268   : > { %997 = vperm.xlu0 %1343, %v1352_v7  }
 0x26f   : > { %1028 = vperm.xlu1 %1344, %v1017_v52  }
 0x270   : > { %1025 = vperm.xlu0 %1343, %v1016_v22  }
 0x2b1   : > { %v1020_v23 = vpop.permute.xlu2 %1019 }
 0x2b2   : > { %vm1030_vm10 = vcmp.eq.s32.totalorder %v1020_v23, 1 }
 0x2b9   : > { %v1023_v28 = vpop.permute.xlu2 %1022 }
 0x2ba   : > { %vm1031_vm9 = vcmp.eq.s32.totalorder %v1023_v28, 1 }
 0x2d1   : > { %v1003_v24 = vpop.permute.xlu1 %1002 }
 0x2d2   : > { %v993_v25 = vpop.permute.xlu0 %992  ;;  %v1012_v43 = vmul.f32 %v1003_v24, %v984_v35 }
 0x2d3   : > { %v1010_v31 = vmul.f32 %v993_v25, %v982_v42 }
 0x2d5   : > { %v1034_v38 = vsel %vm1030_vm10, %v1010_v31, 0.0 }
 0x2d6   : > { %v1041_v50 = vrot.slane %v1034_v38, 4 }
 0x2d9   : > { %v1008_v27 = vpop.permute.xlu1 %1007 }
 0x2da   : > { %v998_v29 = vpop.permute.xlu0 %997  ;;  %v1013_v39 = vmul.f32 %v1008_v27, %v985_v34 }
 0x2db   : > { %v1011_v30 = vmul.f32 %v998_v29, %v983_v26 }
 0x2dd   : > { %v1035_v36 = vsel %vm1031_vm9, %v1011_v30, 0.0 }
 0x2de   : > { %v1053_v45 = vrot.slane %v1035_v36, 4 }
 0x2e1   : > { %v1029_v41 = vpop.permute.xlu1 %1028 }
 0x2e2   : > { %vm1033_vm12 = vcmp.eq.s32.totalorder %v1029_v41, 1  ;;  %v1026_v49 = vpop.permute.xlu0 %1025 }
 0x2e3   : > { %v1037_v15 = vsel %vm1033_vm12, %v1013_v39, 0.0  ;;  %vm1032_vm13 = vcmp.eq.s32.totalorder %v1026_v49, 1 }
 0x2e4   : > { %v1051_v51 = vrot.slane %v1037_v15, 4  ;;  %v1054_v53 = vsel %vm1039_vm11, %v1037_v15, %v1053_v45  ;;  %v1036_v32 = vsel %vm1032_vm13, %v1012_v43, 0.0 }
 0x2e5   : > { %v1062_v20 = vperm.slane %v1054_v53, %v1045_v40  ;;  %v1038_v54 = vrot.slane %v1036_v32, 4  ;;  %v1042_v56 = vsel %vm1039_vm11, %v1036_v32, %v1041_v50 }
 0x2e6   : > { %v1052_v57 = vsel %vm1039_vm11, %v1051_v51, %v1035_v36  ;;  %v1050_v58 = vperm.slane %v1042_v56, %v1045_v40 }
 0x2e7   : > { %v1058_v59 = vperm.slane %v1052_v57, %v1045_v40  ;;  %v1075_v55 = vrot.slane %v1062_v20, 4  ;;  %v1040_v60 = vsel %vm1039_vm11, %v1038_v54, %v1034_v38 }
 0x2e8   : > { %v1046_v13 = vperm.slane %v1040_v60, %v1045_v40  ;;  %v1077_v62 = vrot.slane %v1050_v58, 4 }
 0x2e9   : > { %v1063_v63 = vrot.slane %v1058_v59, 4  ;;  %v1076_v0 = vsel %vm1039_vm11, %v1075_v55, %v1050_v58 }
 0x2ea   : > { %v1065_v1 = vrot.slane %v1046_v13, 4  ;;  %v1078_v2 = vsel %vm1039_vm11, %v1062_v20, %v1077_v62  ;;  %v1082_v17 = vperm.slane %v1076_v0, %v1069_v37 }
 0x2eb   : > { %v1064_v3 = vsel %vm1039_vm11, %v1063_v63, %v1046_v13  ;;  %v1086_v19 = vperm.slane %v1078_v2, %v1069_v37 }
 0x2ec   : > { %v1066_v4 = vsel %vm1039_vm11, %v1058_v59, %v1065_v1  ;;  %v1070_v5 = vperm.slane %v1064_v3, %v1069_v37  ;;  %v1091_v8 = vrot.slane %v1082_v17, 4  ;;  %1100 = vst.msk [vmem:[%s1576_s27 + $0x10] sm:$0xf] %vm1095_vm14, %v1082_v17 }
 0x2ed   : > { %v1074_v9 = vperm.slane %v1066_v4, %v1069_v37  ;;  %v1093_v10 = vrot.slane %v1086_v19, 4  ;;  %1102 = vst.msk [vmem:[%s1576_s27 + $0x18] sm:$0xf] %vm1095_vm14, %v1086_v19 }
 0x2ee   : > { %v1087_v61 = vrot.slane %v1070_v5, 4  ;;  %v1092_v11 = vsel %vm1039_vm11, 0.0, %v1091_v8  ;;  %1096 = vst.msk [vmem:[%s1576_s27] sm:$0xf] %vm1095_vm14, %v1070_v5 }
 0x2ef   : > { %v1089_v12 = vrot.slane %v1074_v9, 4  ;;  %1098 = vst.msk [vmem:[%s1576_s27 + $0x8] sm:$0xf] %vm1095_vm14, %v1074_v9  ;;  %v1094_v18 = vsel %vm1039_vm11, 0.0, %v1093_v10 }
 0x2f0   : > { %v1088_v14 = vsel %vm1039_vm11, 0.0, %v1087_v61  ;;  %1101 = vst.msk [vmem:[%s1576_s27 + $0x14] sm:$0xf] %vm1095_vm14, %v1092_v11 }
 0x2f1   : > { %v1090_v16 = vsel %vm1039_vm11, 0.0, %v1089_v12  ;;  %1097 = vst.msk [vmem:[%s1576_s27 + $0x4] sm:$0xf] %vm1095_vm14, %v1088_v14 }
 0x2f2   : > { %1099 = vst.msk [vmem:[%s1576_s27 + $0xc] sm:$0xf] %vm1095_vm14, %v1090_v16 }
 0x2f3   : > { %1103 = vst.msk [vmem:[%s1576_s27 + $0x1c] sm:$0xf] %vm1095_vm14, %v1094_v18 }
 0x2f4   : > { %1392 = shalt.err (!%p1389_p6)
}
 0x2f5   : > { %s1456_s6 = smov 64   ;;  %s1457_s0 = smov 4  }
 0x2f6   : > { %1257 = dma.vmem_to_hbm [thread:$0]  (%p1526_p4), %s1118_s22, 512, %s1120_s10, %s1105_s11, %s1456_s6, %s1456_s6, %s1457_s0  }
 0x2f7 PF: > { %p1263_p7 = scmp.ge.s32.totalorder %s1445_s24, 2  ;;  %s1134_s25 = sand.u32 1, %s1425_s19  }
 0x2f8   : > { %s1135_s27 = scalar_lea.sflag [#allocation8], %s1134_s25 }
 0x2f9   : > { %p1260_p9 = pnand %p1263_p7, %p1533_p8 }
 0x2fb   : > { %p1261_p10 = pneg %p1260_p9 }
 0x2fd   : > { %1420 = dma.done.wait (%p1261_p10), %s1135_s27, 512  }
 0x2fe   : > { %1422 = vsyncadd (%p1261_p10), %s1135_s27, 4294966784  ;;  %s25_s24 = sadd.s32 1, %s1445_s24   ;;  %s1892_s19 = smov %s1429_s20 }
 0x2ff   : > { %p22_p11 = scmp.ge.s32.totalorder %s25_s24, 4   ;;  %s1893_s20 = smov %s1433_s21 }
 0x300   : > { %s1894_s21 = smov %s1539_s5  ;;  %s1895_s22 = smov %s1441_s23 }
 0x301   : > { %s1896_s23 = smov %s1898_s26  ;;  %24 = sbr.rel (!%p22_p11) target bundleno = 10 (0xa), region = 85 }
 0x306   :  { %1141 = vsyncpa [#allocation8], 1 }
 0x307   :  { %1143 = vsyncpa [#allocation8 + $0x1], 1 }

</bundles_post_ra>
